<compile_context>
chip_gen: v7x
topology: tpu7x:2x2x1
jax: 0.10.0
libtpu: 0.0.40
codegen_flags: <defaults>
</compile_context>

<pallas_src>
import functools

import jax
import jax.numpy as jnp
from jax.experimental import pallas as pl
from jax.experimental.pallas import tpu as pltpu


def _round_up(v, m):
    return (v + m - 1) // m * m


def _ldt_loss_kernel(x_ref, d_ref, t_ref, out_ref, *, n_valid, c_valid, tile_n):
    # x_ref: [tile_n, c_pad] logits (native dtype)
    # d_ref: [tile_n, 1] f32 per-row Delta_list[target]
    # t_ref: [tile_n, 1] int32 target class index
    # out_ref: [1, 8, 128] partial loss sum for this tile (broadcast-filled)
    x = x_ref[...].astype(jnp.float32)
    d = d_ref[...]
    t = t_ref[...]

    c_pad = x.shape[-1]
    z = x * d                                                    # [tile_n, c_pad]

    lane_ids = jax.lax.broadcasted_iota(jnp.int32, (tile_n, c_pad), 1)
    if c_valid != c_pad:
        # padded class lanes must not affect max / logsumexp
        z = jnp.where(lane_ids < c_valid, z, jnp.float32(-1e30))

    # numerically-stable log-softmax + NLL of the target class
    m = jnp.max(z, axis=-1, keepdims=True)                       # [tile_n, 1]
    lse = jnp.log(jnp.sum(jnp.exp(z - m), axis=-1, keepdims=True)) + m
    tgt = jnp.sum(jnp.where(lane_ids == t, z, 0.0), axis=-1, keepdims=True)
    losses = lse - tgt                                           # [tile_n, 1]

    # mask batch-padding rows (last partial tile)
    row_ids = pl.program_id(0) * tile_n + jax.lax.broadcasted_iota(
        jnp.int32, (tile_n, 1), 0)
    losses = jnp.where(row_ids < n_valid, losses, 0.0)

    out_ref[...] = jnp.broadcast_to(jnp.sum(losses), out_ref.shape)


def ldt_loss(x, target, delta_raw, gamma=0.5, reduction=None, tile_n=512):
    """x: [N, C] logits (f32 or bf16), target: [N] int labels, delta_raw: [C]."""
    # TODO(synk): per-class `weight` is not implemented (module default is None).
    n, c = x.shape

    # parameter setup (matches LDTLoss.__init__)
    dl = jnp.power(delta_raw.astype(jnp.float32), gamma)
    delta_list = dl.shape[0] * dl / jnp.sum(dl)                  # [C]

    # tiny wrapper-side gathers / reshapes (no [N, C] one-hot materialized)
    d = delta_list[target].reshape(n, 1).astype(jnp.float32)     # [N, 1]
    t = target.reshape(n, 1).astype(jnp.int32)                   # [N, 1]

    c_pad = _round_up(c, 128)
    tile_n = min(tile_n, _round_up(n, 8))
    # keep double-buffered x tiles comfortably within scoped VMEM on all gens
    while tile_n > 8 and 4 * tile_n * c_pad * x.dtype.itemsize > (24 << 20):
        tile_n = max(8, _round_up(tile_n // 2, 8))
    n_pad = _round_up(n, tile_n)
    num_tiles = n_pad // tile_n

    x_p = jnp.pad(x, ((0, n_pad - n), (0, c_pad - c)))           # zeros; masked in-kernel
    d_p = jnp.pad(d, ((0, n_pad - n), (0, 0)), constant_values=1.0)
    t_p = jnp.pad(t, ((0, n_pad - n), (0, 0)))

    x_tile_bytes = tile_n * c_pad * x.dtype.itemsize
    vmem_limit = int(max(16 << 20, min(64 << 20, 4 * x_tile_bytes + (4 << 20))))

    kernel = functools.partial(
        _ldt_loss_kernel, n_valid=n, c_valid=c, tile_n=tile_n)
    partial_sums = pl.pallas_call(
        kernel,
        out_shape=jax.ShapeDtypeStruct((num_tiles, 8, 128), jnp.float32),
        grid=(num_tiles,),
        in_specs=[
            pl.BlockSpec((tile_n, c_pad), lambda i: (i, 0)),     # x (native dtype)
            pl.BlockSpec((tile_n, 1), lambda i: (i, 0)),         # d = Delta[target]
            pl.BlockSpec((tile_n, 1), lambda i: (i, 0)),         # target index
        ],
        out_specs=pl.BlockSpec((1, 8, 128), lambda i: (i, 0, 0)),
        compiler_params=pltpu.CompilerParams(
            dimension_semantics=("parallel",),
            vmem_limit_bytes=vmem_limit),
    )(x_p, d_p, t_p)

    total = jnp.sum(partial_sums[:, 0, 0])
    if reduction == 'sum':
        return total
    return total / jnp.float32(n)        # mean over batch (weight=None)


def _ldt_loss_ref(x, target, delta_raw, gamma=0.5, reduction=None):
    """Pure-JAX reference matching the PyTorch module."""
    x = x.astype(jnp.float32)
    dl = jnp.power(delta_raw.astype(jnp.float32), gamma)
    delta_list = dl.shape[0] * dl / jnp.sum(dl)
    z = x * delta_list[target][:, None]
    logp = jax.nn.log_softmax(z, axis=-1)
    nll = -jnp.take_along_axis(logp, target[:, None], axis=-1)[:, 0]
    return jnp.sum(nll) if reduction == 'sum' else jnp.mean(nll)


if __name__ == "__main__":
    key = jax.random.PRNGKey(0)
    k1, k2, k3 = jax.random.split(key, 3)

    ok = True
    # (N, C, dtype, tile_n): small shapes; 2nd case exercises multi-tile grid +
    # partial last tile + class padding; 3rd exercises a bf16 input stream.
    cases = [
        (8, 16, jnp.float32, 512),
        (20, 16, jnp.float32, 8),
        (16, 48, jnp.bfloat16, 8),
    ]
    for (N, C, dtype, tn) in cases:
        x = jax.random.normal(k1, (N, C), dtype=jnp.float32).astype(dtype)
        target = jax.random.randint(k2, (N,), 0, C, dtype=jnp.int32)
        delta_raw = jax.random.uniform(k3, (C,), minval=1.0, maxval=100.0)
        for reduction in (None, 'sum'):
            out = ldt_loss(x, target, delta_raw, gamma=0.5,
                           reduction=reduction, tile_n=tn)
            out = jax.block_until_ready(out)
            ref = _ldt_loss_ref(x, target, delta_raw, gamma=0.5,
                                reduction=reduction)
            if not jnp.allclose(out, ref, rtol=1e-5, atol=1e-5):
                ok = False
                print("MISMATCH", N, C, str(dtype), reduction,
                      float(out), float(ref))

    if ok:
        print("KERNEL_OK")
</pallas_src>

<mosaic_0001>
module attributes {stable_mosaic.version = 11 : i64} {
  func.func @_ldt_loss_kernel(%arg0: i32, %arg1: memref<8x128xf32, #tpu.memory_space<vmem>>, %arg2: memref<8x1xf32, #tpu.memory_space<vmem>>, %arg3: memref<8x1xi32, #tpu.memory_space<vmem>>, %arg4: memref<1x8x128xf32, #tpu.memory_space<vmem>>) attributes {dimension_semantics = [#tpu.dimension_semantics<parallel>], iteration_bounds = array<i64: 1>, scalar_prefetch = 0 : i64, scratch_operands = 0 : i64, tpu.core_type = #tpu.core_type<tc>, window_params = [{transform_indices = @transform_0, window_bounds = array<i64: 8, 128>}, {transform_indices = @transform_1, window_bounds = array<i64: 8, 1>}, {transform_indices = @transform_2, window_bounds = array<i64: 8, 1>}, {transform_indices = @transform_3, window_bounds = array<i64: 1, 8, 128>}]} {
    %c0 = arith.constant 0 : index
    %c0_0 = arith.constant 0 : index
    %0 = vector.load %arg1[%c0, %c0_0] : memref<8x128xf32, #tpu.memory_space<vmem>>, vector<8x128xf32>
    %c0_1 = arith.constant 0 : index
    %c0_2 = arith.constant 0 : index
    %1 = vector.load %arg2[%c0_1, %c0_2] : memref<8x1xf32, #tpu.memory_space<vmem>>, vector<8x1xf32>
    %c0_3 = arith.constant 0 : index
    %c0_4 = arith.constant 0 : index
    %2 = vector.load %arg3[%c0_3, %c0_4] : memref<8x1xi32, #tpu.memory_space<vmem>>, vector<8x1xi32>
    %3 = vector.broadcast %1 : vector<8x1xf32> to vector<8x128xf32>
    %4 = arith.mulf %0, %3 : vector<8x128xf32>
    %5 = tpu.iota {dimensions = array<i32: 1>} : vector<8x128xi32>
    %c16_i32 = arith.constant 16 : i32
    %6 = vector.broadcast %c16_i32 : i32 to vector<8x128xi32>
    %7 = arith.cmpi slt, %5, %6 : vector<8x128xi32>
    %cst = arith.constant -1.000000e+30 : f32
    %8 = vector.broadcast %cst : f32 to vector<8x128xf32>
    %9 = arith.select %7, %4, %8 : vector<8x128xi1>, vector<8x128xf32>
    %cst_5 = arith.constant dense<0xFF800000> : vector<8xf32>
    %10 = vector.multi_reduction <maximumf>, %9, %cst_5 [1] : vector<8x128xf32> to vector<8xf32>
    %11 = vector.shape_cast %10 : vector<8xf32> to vector<8x1xf32>
    %12 = vector.broadcast %11 : vector<8x1xf32> to vector<8x128xf32>
    %13 = arith.subf %9, %12 : vector<8x128xf32>
    %14 = math.exp %13 : vector<8x128xf32>
    %cst_6 = arith.constant dense<0.000000e+00> : vector<8xf32>
    %15 = vector.multi_reduction <add>, %14, %cst_6 [1] : vector<8x128xf32> to vector<8xf32>
    %16 = vector.shape_cast %15 : vector<8xf32> to vector<8x1xf32>
    %17 = math.log %16 : vector<8x1xf32>
    %18 = arith.addf %17, %11 : vector<8x1xf32>
    %19 = vector.broadcast %2 : vector<8x1xi32> to vector<8x128xi32>
    %20 = arith.cmpi eq, %5, %19 : vector<8x128xi32>
    %cst_7 = arith.constant 0.000000e+00 : f32
    %21 = vector.broadcast %cst_7 : f32 to vector<8x128xf32>
    %22 = arith.select %20, %9, %21 : vector<8x128xi1>, vector<8x128xf32>
    %cst_8 = arith.constant dense<0.000000e+00> : vector<8xf32>
    %23 = vector.multi_reduction <add>, %22, %cst_8 [1] : vector<8x128xf32> to vector<8xf32>
    %24 = vector.shape_cast %23 : vector<8xf32> to vector<8x1xf32>
    %25 = arith.subf %18, %24 : vector<8x1xf32>
    %c8_i32 = arith.constant 8 : i32
    %26 = arith.muli %arg0, %c8_i32 : i32
    %27 = tpu.iota {dimensions = array<i32: 0>} : vector<8x1xi32>
    %28 = vector.broadcast %26 : i32 to vector<8x1xi32>
    %29 = arith.addi %28, %27 : vector<8x1xi32>
    %c8_i32_9 = arith.constant 8 : i32
    %30 = vector.broadcast %c8_i32_9 : i32 to vector<8x1xi32>
    %31 = arith.cmpi slt, %29, %30 : vector<8x1xi32>
    %cst_10 = arith.constant 0.000000e+00 : f32
    %32 = vector.broadcast %cst_10 : f32 to vector<8x1xf32>
    %33 = arith.select %31, %25, %32 : vector<8x1xi1>, vector<8x1xf32>
    %34 = vector.shape_cast %33 : vector<8x1xf32> to vector<1x8x1xf32>
    %cst_11 = arith.constant dense<0.000000e+00> : vector<1xf32>
    %35 = vector.multi_reduction <add>, %34, %cst_11 [1, 2] : vector<1x8x1xf32> to vector<1xf32>
    %36 = vector.shape_cast %35 : vector<1xf32> to vector<1x1x1xf32>
    %37 = vector.extract %36[0, 0, 0] : f32 from vector<1x1x1xf32>
    %38 = vector.broadcast %37 : f32 to vector<1x8x128xf32>
    %c0_12 = arith.constant 0 : index
    %c0_13 = arith.constant 0 : index
    %c0_14 = arith.constant 0 : index
    %39 = vector.load %arg4[%c0_12, %c0_13, %c0_14] : memref<1x8x128xf32, #tpu.memory_space<vmem>>, vector<1x8x128xf32>
    tpu.vector_store %arg4[%c0_12, %c0_13, %c0_14], %38 {strides = array<i32>} : memref<1x8x128xf32, #tpu.memory_space<vmem>>, vector<1x8x128xf32>,
    return
  }
  func.func @transform_0(%arg0: i32) -> (i32, i32) {
    %c0_i32 = arith.constant 0 : i32
    %c0_i32_0 = arith.constant 0 : i32
    return %arg0, %c0_i32 : i32, i32
  }
  func.func @transform_1(%arg0: i32) -> (i32, i32) {
    %c0_i32 = arith.constant 0 : i32
    %c0_i32_0 = arith.constant 0 : i32
    return %arg0, %c0_i32 : i32, i32
  }
  func.func @transform_2(%arg0: i32) -> (i32, i32) {
    %c0_i32 = arith.constant 0 : i32
    %c0_i32_0 = arith.constant 0 : i32
    return %arg0, %c0_i32 : i32, i32
  }
  func.func @transform_3(%arg0: i32) -> (i32, i32, i32) {
    %c0_i32 = arith.constant 0 : i32
    %c0_i32_0 = arith.constant 0 : i32
    %c0_i32_1 = arith.constant 0 : i32
    return %arg0, %c0_i32, %c0_i32_0 : i32, i32, i32
  }
}

</mosaic_0001>

<bundles_post_ra>
// kernel: tpu_custom_call.1
= control target key start
LH: loop header
LB: loop body
LE: loop exit
PB: predicated region body
PF: predicated region fallthrough
CT: control target
= control target key end

     0   :  { %s157_s0 = inlined_call_operand.vmem [shape: f32[8,128], index: 0, kind: input, shape index: {}]   ;;  %s158_s1 = inlined_call_operand.vmem [shape: f32[8,1], index: 1, kind: input, shape index: {}]   ;;  %s159_s2 = inlined_call_operand.vmem [shape: s32[8,1], index: 2, kind: input, shape index: {}]   ;;  %s160_s3 = inlined_call_operand.hbm [shape: f32[1,8,128], index: 3, kind: output, shape index: {}]  }
   0x1   :  { %v16_v0 = vld [vmem:[%s158_s1] sm:$0xff] }
   0x2   :  { %v17_v1 = vld [vmem:[%s159_s2] sm:$0xff] }
   0x3   :  { %8 = vsyncpa [#allocation3], 0  ;;  %v114_v2 = vmov 0   ;;  %v24_v3 = vlaneseq  ;;  %v15_v5 = vld [vmem:[%s157_s0] sm:$0xff]  ;;  %vm53_vm2 = vcmask 7168   ;;  %s115_s0 = smov [#allocation2]  }
   0x4   :  { %84 = vset.pattern.permute.xlu0 %v114_v2  ;;  %85 = vset.pattern.permute.xlu1 %v114_v2  ;;  %s72_s1 = sshll.u32 %s115_s0, 4  ;;  %s73_s1 = int_to_ptr.vmem [resolvable:$true] %s72_s1 }
   0x5   :  { %20 = vperm.xlu0 %84, %v16_v0   ;;  %39 = vperm.xlu1 %85, %v17_v1   ;;  %v25_v4 = vand.u32 127, %v24_v3  ;;  %s90_s18 = scalar_lea.vmem %s73_s1, 128  ;;  %p95_p1 = scmp.lt.s32.totalorder %s73_s1, %s73_s1 }
   0x6   :  { %p91_p0 = scmp.ne.s32.totalorder %s73_s1, %s90_s18  ;;  %p96_p2 = scmp.lt.s32.totalorder %s90_s18, %s90_s18 }
   0x7   :  { %vm26_vm0 = vcmp.lt.s32.totalorder %v25_v4, 16 }
   0x8   :  { %p97_p3 = por %p96_p2, %p95_p1 }
   0xa   :  { %p98_p4 = pnand %p97_p3, %p91_p0 }
  0x84   :  { %v21_v6 = vpop.permute.xlu0 %20  ;;  %v40_v8 = vpop.permute.xlu1 %39 }
  0x85   :  { %v23_v7 = vmul.f32 %v21_v6, %v15_v5  ;;  %vm41_vm1 = vcmp.eq.s32.totalorder %v25_v4, %v40_v8 }
  0x87   :  { %v27_v9 = vsel %vm26_vm0, %v23_v7, -1e+30 }
  0x88   :  { %28 = vmax.xlane.f32.xlu0 %v27_v9  ;;  %v42_v10 = vsel %vm41_vm1, %v27_v9, 0.0 }
  0x8c   :  { %43 = vadd.xlane.f32.xlu0 %v42_v10 }
 0x115   :  { %v29_v11 = vpop.xlane.xlu0 %28 }
 0x116   :  { %v30_v12 = vsub.f32 %v27_v9, %v29_v11 }
 0x118   :  { %v31_v13 = vmul.f32 1.442695, %v30_v12 }
 0x119   :  { %v44_v19 = vpop.xlane.xlu0 %43 }
 0x11a   :  { %86 = vpow2.f32 %v31_v13 }
 0x124   :  { %v87_v14 = vpop.eup %86 }
 0x125   :  { %33 = vadd.xlane.f32.xlu1 %v87_v14 }
 0x1b2   :  { %v34_v15 = vpop.xlane.xlu1 %33 }
 0x1b3   :  { %88 = vlog2.f32 %v34_v15 }
 0x1bd   :  { %v89_v16 = vpop.eup %88 }
 0x1be   :  { %v36_v17 = vmul.f32 0.6931472, %v89_v16 }
 0x1c0   :  { %v37_v18 = vadd.f32 %v36_v17, %v29_v11 }
 0x1c2   :  { %v45_v20 = vsub.f32 %v37_v18, %v44_v19 }
 0x1c4   :  { %v54_v21 = vsel %vm53_vm2, %v45_v20, 0.0 }
 0x1c5   :  { %55 = vadd.xlane.f32.xlu0 %v54_v21 }
 0x252   :  { %v56_v22 = vpop.xlane.xlu0 %55 }
 0x253   :  { %v57_v23 = vrot.slane %v56_v22, 4 }
 0x255   :  { %v58_v24 = vadd.f32 %v57_v23, %v56_v22 }
 0x257   :  { %v59_v25 = vrot.slane %v58_v24, 2 }
 0x259   :  { %v60_v26 = vadd.f32 %v59_v25, %v58_v24 }
 0x25b   :  { %v61_v27 = vrot.slane %v60_v26, 1 }
 0x25d   :  { %v62_v28 = vadd.f32 %v61_v27, %v60_v26 }
 0x25f   :  { %80 = vpush %v62_v28 }
 0x290   :  { %s81_s2 = spop %80 }
 0x291   :  { %v64_v29 = vstv %s81_s2 }
 0x292   :  { %65 = vst [vmem:[#allocation2] sm:$0xff] %v64_v29 }
 0x293   :  { %101 = shalt.err (!%p98_p4)
}
 0x294   :  { %s102_s21 = scalar_lea.hbm %s160_s3, 128 }
 0x295   :  { %p103_p5 = scmp.ne.s32.totalorder %s160_s3, %s102_s21  ;;  %p106_p6 = scmp.lt.u32.totalorder %s102_s21, %s160_s3 }
 0x297   :  { %p108_p7 = pnand %p106_p6, %p103_p5 }
 0x299   :  { %111 = shalt.err (!%p108_p7)
}
 0x29a   :  { %75 = dma.vmem_to_hbm [thread:$0]  %s73_s1, 128, %s160_s3, [#allocation3]  }
 0x29b   :  { %112 = dma.done.wait [#allocation3], 128  }
 0x29c   :  { %113 = vsyncadd [#allocation3], 4294967168 }
 0x29d   :  { %79 = vsyncpa [#allocation3], 1 }

</bundles_post_ra>
